<compile_context>
chip_gen: v7x
topology: tpu7x:2x2x1
jax: 0.10.0
libtpu: 0.0.40
codegen_flags: <defaults>
</compile_context>

<pallas_src>
import jax
import jax.numpy as jnp
from jax.experimental import pallas as pl
from jax.experimental.pallas import tpu as pltpu


def _make_fused_kernel(C, K, Wp, P, n_valid, eps):
    """Fused BN(train-mode) + ReLU + 3x3 conv (im2col patch + single K=K*K*C matmul)."""
    inv_n = 1.0 / float(n_valid)

    def kernel(x_ref, gamma_ref, beta_ref, mask_ref, w_ref, o_ref, patch_ref):
        x = x_ref[...]              # (C, Q) f32, channel-major padded grid (zeros at pads)
        mask = mask_ref[...]        # (1, Q) f32: 1.0 at real pixels, 0.0 at padding

        # ---- training-mode BatchNorm statistics (two-pass, per channel row) ----
        mean = jnp.sum(x, axis=1, keepdims=True) * inv_n            # (C, 1)
        diff = (x - mean) * mask                                    # exact zeros at pads
        var = jnp.sum(diff * diff, axis=1, keepdims=True) * inv_n   # (C, 1)
        scale = gamma_ref[...] * jax.lax.rsqrt(var + eps)           # (C, 1)

        # ---- BN + ReLU (f32 VPU), re-masked so padding stays exactly zero, one bf16 cast ----
        y = (jnp.maximum(diff * scale + beta_ref[...], 0.0) * mask).astype(jnp.bfloat16)

        # ---- im2col patch build: each of the 9 taps is a pure static lane shift of y ----
        for t in range(K * K):
            dh, dw = divmod(t, K)
            off = dh * Wp + dw                                   # 0,1,2, 32,33,34, 64,65,66
            patch_ref[t * C:(t + 1) * C, :] = y[:, off:off + P]  # aligned 16-sublane store

        # ---- single K=144 MXU matmul, f32 accumulation in the MXU, one dense store ----
        o_ref[...] = jnp.dot(w_ref[...], patch_ref[...],
                             preferred_element_type=jnp.float32)

    return kernel


def forward(x_nchw, gamma, beta, w, eps=1e-3):
    N, C, H, W = x_nchw.shape
    assert N == 1, "kernel is written for batch size 1 (as in the reference module)"
    Cout, Cin, KH, KW = w.shape
    assert Cin == C and KH == 3 and KW == 3

    Wp = 32                         # padded row width  (power of two -> no horizontal masks)
    Hp = 32                         # padded row count  -> flattened grid Q = 1024 lanes
    Q = Hp * Wp
    P = H * Wp                      # 896 output-grid positions (junk cols sliced by wrapper)

    # Channel-major padded activation (16, 1024): zero ring of 1 top/left, 3 bottom/right.
    x_ext = jnp.pad(x_nchw[0].astype(jnp.float32),
                    ((0, 0), (1, Hp - H - 1), (1, Wp - W - 1))).reshape(C, Q)

    # Validity mask over the padded grid (1, 1024): 1.0 where a real pixel lives.
    rb = (jnp.arange(Hp) >= 1) & (jnp.arange(Hp) <= H)
    cb = (jnp.arange(Wp) >= 1) & (jnp.arange(Wp) <= W)
    mask = (rb[:, None] & cb[None, :]).astype(jnp.float32).reshape(1, Q)

    # Conv weight (Cout,Cin,KH,KW) -> (Cout, KH*KW*Cin), tap-major / channel-minor, bf16.
    w2 = jnp.transpose(w.astype(jnp.float32), (0, 2, 3, 1)).reshape(Cout, KH * KW * C)
    w2 = w2.astype(jnp.bfloat16)

    kernel = _make_fused_kernel(C, KH, Wp, P, H * W, float(eps))
    vmem = pl.BlockSpec(memory_space=pltpu.MemorySpace.VMEM)

    out2d = pl.pallas_call(
        kernel,
        out_shape=jax.ShapeDtypeStruct((Cout, P), jnp.float32),
        in_specs=[vmem] * 5,
        out_specs=vmem,
        scratch_shapes=[pltpu.VMEM((KH * KW * C, P), jnp.bfloat16)],   # im2col patch (~252 KB)
    )(x_ext,
      gamma.reshape(C, 1).astype(jnp.float32),
      beta.reshape(C, 1).astype(jnp.float32),
      mask,
      w2)

    # (Cout, 896) -> (Cout, 28, 32) -> drop the 4 junk columns per row -> NCHW.
    out = out2d.reshape(Cout, H, Wp)[:, :, :W]
    return out[None].astype(jnp.float32)


def reference(x_nchw, gamma, beta, w, eps=1e-3):
    """Pure-JAX reference (training-mode BN + ReLU + conv) for a sanity check."""
    x = x_nchw.astype(jnp.float32)
    mean = jnp.mean(x, axis=(0, 2, 3), keepdims=True)
    var = jnp.mean((x - mean) ** 2, axis=(0, 2, 3), keepdims=True)
    xn = (x - mean) / jnp.sqrt(var + eps)
    y = jnp.maximum(xn * gamma[None, :, None, None] + beta[None, :, None, None], 0.0)
    return jax.lax.conv_general_dilated(
        y, w.astype(jnp.float32), window_strides=(1, 1), padding=((1, 1), (1, 1)),
        dimension_numbers=("NCHW", "OIHW", "NCHW"))


if __name__ == "__main__":
    key = jax.random.PRNGKey(0)
    kx, kw, kg, kb = jax.random.split(key, 4)

    N, C, H, W = 1, 16, 28, 28
    Cout, KH, KW = 32, 3, 3

    x = jax.random.normal(kx, (N, C, H, W), dtype=jnp.float32)
    w = jax.random.normal(kw, (Cout, C, KH, KW), dtype=jnp.float32) * (2.0 / (C * KH * KW)) ** 0.5
    gamma = 1.0 + 0.1 * jax.random.normal(kg, (C,), dtype=jnp.float32)
    beta = 0.1 * jax.random.normal(kb, (C,), dtype=jnp.float32)

    fwd = jax.jit(forward)
    out = jax.block_until_ready(fwd(x, gamma, beta, w))
    assert out.shape == (1, Cout, H, W), out.shape

    ref = jax.block_until_ready(reference(x, gamma, beta, w))
    max_err = float(jnp.max(jnp.abs(out - ref)))
    # bf16 MXU operands -> slightly looser tolerance than pure-f32
    assert jnp.allclose(out, ref, atol=5e-2, rtol=5e-2), max_err

    print("KERNEL_OK")
</pallas_src>

<mosaic_0001>
module attributes {stable_mosaic.version = 11 : i64} {
  func.func @kernel(%arg0: memref<16x1024xf32, #tpu.memory_space<vmem>>, %arg1: memref<16x1xf32, #tpu.memory_space<vmem>>, %arg2: memref<16x1xf32, #tpu.memory_space<vmem>>, %arg3: memref<1x1024xf32, #tpu.memory_space<vmem>>, %arg4: memref<32x144xbf16, #tpu.memory_space<vmem>>, %arg5: memref<32x896xf32, #tpu.memory_space<vmem>>, %arg6: memref<144x896xbf16, #tpu.memory_space<vmem>>) attributes {dimension_semantics = [], scalar_prefetch = 0 : i64, scratch_operands = 1 : i64, tpu.core_type = #tpu.core_type<tc>} {
    %c0 = arith.constant 0 : index
    %c0_0 = arith.constant 0 : index
    %0 = vector.load %arg0[%c0, %c0_0] : memref<16x1024xf32, #tpu.memory_space<vmem>>, vector<16x1024xf32>
    %c0_1 = arith.constant 0 : index
    %c0_2 = arith.constant 0 : index
    %1 = vector.load %arg3[%c0_1, %c0_2] : memref<1x1024xf32, #tpu.memory_space<vmem>>, vector<1x1024xf32>
    %cst = arith.constant dense<0.000000e+00> : vector<16xf32>
    %2 = vector.multi_reduction <add>, %0, %cst [1] : vector<16x1024xf32> to vector<16xf32>
    %3 = vector.shape_cast %2 : vector<16xf32> to vector<16x1xf32>
    %cst_3 = arith.constant 0.00127551018 : f32
    %4 = vector.broadcast %cst_3 : f32 to vector<16x1xf32>
    %5 = arith.mulf %3, %4 : vector<16x1xf32>
    %6 = vector.broadcast %5 : vector<16x1xf32> to vector<16x1024xf32>
    %7 = arith.subf %0, %6 : vector<16x1024xf32>
    %8 = vector.broadcast %1 : vector<1x1024xf32> to vector<16x1024xf32>
    %9 = arith.mulf %7, %8 : vector<16x1024xf32>
    %10 = arith.mulf %9, %9 : vector<16x1024xf32>
    %cst_4 = arith.constant dense<0.000000e+00> : vector<16xf32>
    %11 = vector.multi_reduction <add>, %10, %cst_4 [1] : vector<16x1024xf32> to vector<16xf32>
    %12 = vector.shape_cast %11 : vector<16xf32> to vector<16x1xf32>
    %cst_5 = arith.constant 0.00127551018 : f32
    %13 = vector.broadcast %cst_5 : f32 to vector<16x1xf32>
    %14 = arith.mulf %12, %13 : vector<16x1xf32>
    %c0_6 = arith.constant 0 : index
    %c0_7 = arith.constant 0 : index
    %15 = vector.load %arg1[%c0_6, %c0_7] : memref<16x1xf32, #tpu.memory_space<vmem>>, vector<16x1xf32>
    %cst_8 = arith.constant 1.000000e-03 : f32
    %16 = vector.broadcast %cst_8 : f32 to vector<16x1xf32>
    %17 = arith.addf %14, %16 : vector<16x1xf32>
    %18 = math.rsqrt %17 : vector<16x1xf32>
    %19 = arith.mulf %15, %18 : vector<16x1xf32>
    %20 = vector.broadcast %19 : vector<16x1xf32> to vector<16x1024xf32>
    %21 = arith.mulf %9, %20 : vector<16x1024xf32>
    %c0_9 = arith.constant 0 : index
    %c0_10 = arith.constant 0 : index
    %22 = vector.load %arg2[%c0_9, %c0_10] : memref<16x1xf32, #tpu.memory_space<vmem>>, vector<16x1xf32>
    %23 = vector.broadcast %22 : vector<16x1xf32> to vector<16x1024xf32>
    %24 = arith.addf %21, %23 : vector<16x1024xf32>
    %cst_11 = arith.constant 0.000000e+00 : f32
    %25 = vector.broadcast %cst_11 : f32 to vector<16x1024xf32>
    %26 = arith.maximumf %24, %25 : vector<16x1024xf32>
    %27 = vector.broadcast %1 : vector<1x1024xf32> to vector<16x1024xf32>
    %28 = arith.mulf %26, %27 : vector<16x1024xf32>
    %29 = arith.truncf %28 : vector<16x1024xf32> to vector<16x1024xbf16>
    %30 = vector.extract_strided_slice %29 {offsets = [0, 0], sizes = [16, 896], strides = [1, 1]} : vector<16x1024xbf16> to vector<16x896xbf16>
    %c0_12 = arith.constant 0 : index
    %c0_13 = arith.constant 0 : index
    %31 = vector.load %arg6[%c0_12, %c0_13] : memref<144x896xbf16, #tpu.memory_space<vmem>>, vector<16x896xbf16>
    tpu.vector_store %arg6[%c0_12, %c0_13], %30 {strides = array<i32>} : memref<144x896xbf16, #tpu.memory_space<vmem>>, vector<16x896xbf16>,
    %32 = vector.extract_strided_slice %29 {offsets = [0, 1], sizes = [16, 896], strides = [1, 1]} : vector<16x1024xbf16> to vector<16x896xbf16>
    %c16 = arith.constant 16 : index
    %c0_14 = arith.constant 0 : index
    %33 = vector.load %arg6[%c16, %c0_14] : memref<144x896xbf16, #tpu.memory_space<vmem>>, vector<16x896xbf16>
    tpu.vector_store %arg6[%c16, %c0_14], %32 {strides = array<i32>} : memref<144x896xbf16, #tpu.memory_space<vmem>>, vector<16x896xbf16>,
    %34 = vector.extract_strided_slice %29 {offsets = [0, 2], sizes = [16, 896], strides = [1, 1]} : vector<16x1024xbf16> to vector<16x896xbf16>
    %c32 = arith.constant 32 : index
    %c0_15 = arith.constant 0 : index
    %35 = vector.load %arg6[%c32, %c0_15] : memref<144x896xbf16, #tpu.memory_space<vmem>>, vector<16x896xbf16>
    tpu.vector_store %arg6[%c32, %c0_15], %34 {strides = array<i32>} : memref<144x896xbf16, #tpu.memory_space<vmem>>, vector<16x896xbf16>,
    %36 = vector.extract_strided_slice %29 {offsets = [0, 32], sizes = [16, 896], strides = [1, 1]} : vector<16x1024xbf16> to vector<16x896xbf16>
    %c48 = arith.constant 48 : index
    %c0_16 = arith.constant 0 : index
    %37 = vector.load %arg6[%c48, %c0_16] : memref<144x896xbf16, #tpu.memory_space<vmem>>, vector<16x896xbf16>
    tpu.vector_store %arg6[%c48, %c0_16], %36 {strides = array<i32>} : memref<144x896xbf16, #tpu.memory_space<vmem>>, vector<16x896xbf16>,
    %38 = vector.extract_strided_slice %29 {offsets = [0, 33], sizes = [16, 896], strides = [1, 1]} : vector<16x1024xbf16> to vector<16x896xbf16>
    %c64 = arith.constant 64 : index
    %c0_17 = arith.constant 0 : index
    %39 = vector.load %arg6[%c64, %c0_17] : memref<144x896xbf16, #tpu.memory_space<vmem>>, vector<16x896xbf16>
    tpu.vector_store %arg6[%c64, %c0_17], %38 {strides = array<i32>} : memref<144x896xbf16, #tpu.memory_space<vmem>>, vector<16x896xbf16>,
    %40 = vector.extract_strided_slice %29 {offsets = [0, 34], sizes = [16, 896], strides = [1, 1]} : vector<16x1024xbf16> to vector<16x896xbf16>
    %c80 = arith.constant 80 : index
    %c0_18 = arith.constant 0 : index
    %41 = vector.load %arg6[%c80, %c0_18] : memref<144x896xbf16, #tpu.memory_space<vmem>>, vector<16x896xbf16>
    tpu.vector_store %arg6[%c80, %c0_18], %40 {strides = array<i32>} : memref<144x896xbf16, #tpu.memory_space<vmem>>, vector<16x896xbf16>,
    %42 = vector.extract_strided_slice %29 {offsets = [0, 64], sizes = [16, 896], strides = [1, 1]} : vector<16x1024xbf16> to vector<16x896xbf16>
    %c96 = arith.constant 96 : index
    %c0_19 = arith.constant 0 : index
    %43 = vector.load %arg6[%c96, %c0_19] : memref<144x896xbf16, #tpu.memory_space<vmem>>, vector<16x896xbf16>
    tpu.vector_store %arg6[%c96, %c0_19], %42 {strides = array<i32>} : memref<144x896xbf16, #tpu.memory_space<vmem>>, vector<16x896xbf16>,
    %44 = vector.extract_strided_slice %29 {offsets = [0, 65], sizes = [16, 896], strides = [1, 1]} : vector<16x1024xbf16> to vector<16x896xbf16>
    %c112 = arith.constant 112 : index
    %c0_20 = arith.constant 0 : index
    %45 = vector.load %arg6[%c112, %c0_20] : memref<144x896xbf16, #tpu.memory_space<vmem>>, vector<16x896xbf16>
    tpu.vector_store %arg6[%c112, %c0_20], %44 {strides = array<i32>} : memref<144x896xbf16, #tpu.memory_space<vmem>>, vector<16x896xbf16>,
    %46 = vector.extract_strided_slice %29 {offsets = [0, 66], sizes = [16, 896], strides = [1, 1]} : vector<16x1024xbf16> to vector<16x896xbf16>
    %c128 = arith.constant 128 : index
    %c0_21 = arith.constant 0 : index
    %47 = vector.load %arg6[%c128, %c0_21] : memref<144x896xbf16, #tpu.memory_space<vmem>>, vector<16x896xbf16>
    tpu.vector_store %arg6[%c128, %c0_21], %46 {strides = array<i32>} : memref<144x896xbf16, #tpu.memory_space<vmem>>, vector<16x896xbf16>,
    %c0_22 = arith.constant 0 : index
    %c0_23 = arith.constant 0 : index
    %48 = vector.load %arg4[%c0_22, %c0_23] : memref<32x144xbf16, #tpu.memory_space<vmem>>, vector<32x144xbf16>
    %c0_24 = arith.constant 0 : index
    %c0_25 = arith.constant 0 : index
    %49 = vector.load %arg6[%c0_24, %c0_25] : memref<144x896xbf16, #tpu.memory_space<vmem>>, vector<144x896xbf16>
    %cst_26 = arith.constant dense<0.000000e+00> : vector<32x896xf32>
    %50 = tpu.matmul %48, %49, %cst_26 {dimension_numbers = #tpu.dot_dimension_numbers<[1], [0], [0], [1], [0, 0, 1, 1], [], []>} : vector<32x144xbf16>, vector<144x896xbf16>, vector<32x896xf32> -> vector<32x896xf32>
    %c0_27 = arith.constant 0 : index
    %c0_28 = arith.constant 0 : index
    %51 = vector.load %arg5[%c0_27, %c0_28] : memref<32x896xf32, #tpu.memory_space<vmem>>, vector<32x896xf32>
    tpu.vector_store %arg5[%c0_27, %c0_28], %50 {strides = array<i32>} : memref<32x896xf32, #tpu.memory_space<vmem>>, vector<32x896xf32>,
    return
  }
}

</mosaic_0001>

<bundles_post_ra>
// kernel: forward.1
= control target key start
LH: loop header
LB: loop body
LE: loop exit
PB: predicated region body
PF: predicated region fallthrough
CT: control target
= control target key end

     0   :  { %v75_v30 = vlaneseq  ;;  %s956_s8 = smov 96   ;;  %s957_s9 = smov 95   ;;  %vm673_vm0 = vcmask 130048   ;;  %vm300_vm1 = vcmask 1039360   ;;  %vm338_vm2 = vcmask 1031168   ;;  %s1578_s0 = inlined_call_operand.vmem [shape: f32[16,1024], index: 0, kind: input, shape index: {}]   ;;  %s1579_s3 = inlined_call_operand.vmem [shape: f32[1,1024], index: 3, kind: input, shape index: {}]   ;;  %s1580_s2 = inlined_call_operand.vmem [shape: f32[16,1], index: 2, kind: input, shape index: {}]   ;;  %s1581_s1 = inlined_call_operand.vmem [shape: f32[16,1], index: 1, kind: input, shape index: {}]   ;;  %s1582_s4 = inlined_call_operand.vmem [shape: bf16[32,144], index: 4, kind: input, shape index: {}]   ;;  %s1583_s5 = inlined_call_operand.vmem [shape: f32[32,896], index: 5, kind: output, shape index: {}]  }
   0x1   :  { %v21_v0 = vld [vmem:[%s1578_s0] sm:$0xff]  ;;  %v22_v1 = vld [vmem:[%s1578_s0 + $0x8] sm:$0xff]  ;;  %v23_v2 = vld [vmem:[%s1578_s0 + $0x10] sm:$0xff]  ;;  %s958_s10 = smov 94   ;;  %s959_s11 = smov 64   ;;  %vm376_vm3 = vcmask 785408  }
   0x2   :  { %v38_v3 = vadd.f32 %v22_v1, %v21_v0  ;;  %v24_v4 = vld [vmem:[%s1578_s0 + $0x18] sm:$0xff]  ;;  %v1007_v5 = vld [vmem:[%s1578_s0 + $0x40] sm:$0xff]  ;;  %v1012_v7 = vld [vmem:[%s1578_s0 + $0x48] sm:$0xff]  ;;  %v76_v31 = vshrl.u32 %v75_v30, 7  ;;  %s960_s12 = smov 63   ;;  %s961_s13 = smov 62  }
   0x3   :  { %v1017_v8 = vld [vmem:[%s1578_s0 + $0x50] sm:$0xff]  ;;  %v25_v9 = vld [vmem:[%s1578_s0 + $0x20] sm:$0xff]  ;;  %v47_v10 = vadd.f32 %v1012_v7, %v1007_v5  ;;  %v1027_v12 = vld [vmem:[%s1578_s0 + $0x58] sm:$0xff]  ;;  %vm414_vm4 = vcmask 777216   ;;  %vm452_vm5 = vcmask 769024   ;;  %vm490_vm6 = vcmask 523264  }
   0x4   :  { %v39_v6 = vadd.f32 %v38_v3, %v23_v2  ;;  %v1032_v13 = vld [vmem:[%s1578_s0 + $0x28] sm:$0xff]  ;;  %v1038_v16 = vld [vmem:[%s1578_s0 + $0x60] sm:$0xff]  ;;  %v1043_v17 = vld [vmem:[%s1578_s0 + $0x30] sm:$0xff]  ;;  %v77_v32 = vsub.s32 0, %v76_v31  ;;  %v81_v33 = vsub.s32 1, %v76_v31  ;;  %v85_v34 = vsub.s32 2, %v76_v31 }
   0x5   :  { %v48_v14 = vadd.f32 %v47_v10, %v1017_v8  ;;  %v1050_v20 = vld [vmem:[%s1578_s0 + $0x68] sm:$0xff]  ;;  %v1055_v21 = vld [vmem:[%s1578_s0 + $0x38] sm:$0xff]  ;;  %v1062_v24 = vld [vmem:[%s1578_s0 + $0x70] sm:$0xff]  ;;  %v89_v36 = vsub.s32 3, %v76_v31  ;;  %v93_v38 = vsub.s32 4, %v76_v31  ;;  %v97_v44 = vsub.s32 5, %v76_v31 }
   0x6   :  { %v40_v11 = vadd.f32 %v39_v6, %v24_v4  ;;  %v1069_v27 = vld [vmem:[%s1578_s0 + $0x78] sm:$0xff]  ;;  %v37_v35 = vld [vmem:[%s1579_s3] sm:$0xff]  ;;  %v101_v52 = vsub.s32 6, %v76_v31  ;;  %v105_v58 = vsub.s32 7, %v76_v31  ;;  %vm528_vm7 = vcmask 515072  }
   0x7   :  { %v49_v18 = vadd.f32 %v48_v14, %v1027_v12  ;;  %v1076_v40 = vrot.slane %v37_v35, %v77_v32  ;;  %v1078_v41 = vrot.slane %v37_v35, %v81_v33  ;;  %v1080_v42 = vrot.slane %v37_v35, %v85_v34 }
   0x8   :  { %v41_v15 = vadd.f32 %v40_v11, %v25_v9  ;;  %v1082_v43 = vrot.slane %v37_v35, %v89_v36  ;;  %v1084_v51 = vrot.slane %v37_v35, %v93_v38  ;;  %v1095_v57 = vrot.slane %v37_v35, %v97_v44 }
   0x9   :  { %v50_v22 = vadd.f32 %v49_v18, %v1038_v16  ;;  %v1116_v10 = vrot.slane %v37_v35, %v105_v58  ;;  %vm566_vm8 = vcmask 506880  }
   0xa   :  { %v42_v19 = vadd.f32 %v41_v15, %v1032_v13 }
   0xb   :  { %v51_v25 = vadd.f32 %v50_v22, %v1050_v20 }
   0xc   :  { %v43_v23 = vadd.f32 %v42_v19, %v1043_v17 }
   0xd   :  { %v52_v28 = vadd.f32 %v51_v25, %v1062_v24 }
   0xe   :  { %v44_v26 = vadd.f32 %v43_v23, %v1055_v21 }
   0xf   :  { %v53_v29 = vadd.f32 %v52_v28, %v1069_v27 }
  0x10   :  { %45 = vadd.xlane.f32.xlu0 %v44_v26 }
  0x14   :  { %54 = vadd.xlane.f32.xlu0 %v53_v29 }
  0x9d   :  { %v46_v37 = vpop.xlane.xlu0 %45 }
  0x9e   :  { %v56_v39 = vmul.f32 0.0012755102, %v46_v37 }
  0xa0   :  { %v58_v45 = vsub.f32 %v21_v0, %v56_v39  ;;  %v59_v46 = vsub.f32 %v22_v1, %v56_v39  ;;  %v60_v47 = vsub.f32 %v23_v2, %v56_v39  ;;  %v61_v48 = vsub.f32 %v24_v4, %v56_v39 }
  0xa1   :  { %v55_v49 = vpop.xlane.xlu0 %54  ;;  %v62_v50 = vsub.f32 %v25_v9, %v56_v39  ;;  %v63_v59 = vsub.f32 %v1032_v13, %v56_v39  ;;  %v64_v63 = vsub.f32 %v1043_v17, %v56_v39  ;;  %v1106_v0 = vrot.slane %v37_v35, %v101_v52 }
  0xa2   :  { %v57_v53 = vmul.f32 0.0012755102, %v55_v49  ;;  %v1087_v54 = vmul.f32 %v1076_v40, %v58_v45  ;;  %v1090_v55 = vmul.f32 %v1078_v41, %v59_v46  ;;  %v1093_v56 = vmul.f32 %v1080_v42, %v60_v47 }
  0xa3   :  { %v1099_v60 = vmul.f32 %v1082_v43, %v61_v48  ;;  %v1109_v1 = vmul.f32 %v1084_v51, %v62_v50  ;;  %v65_v9 = vsub.f32 %v1055_v21, %v56_v39  ;;  %v1121_v14 = vmul.f32 %v1095_v57, %v63_v59 }
  0xa4   :  { %v131_v61 = vmul.f32 %v1087_v54, %v1087_v54  ;;  %v132_v62 = vmul.f32 %v1090_v55, %v1090_v55  ;;  %v133_v2 = vmul.f32 %v1093_v56, %v1093_v56  ;;  %v66_v4 = vsub.f32 %v1007_v5, %v57_v53 }
  0xa5   :  { %v67_v6 = vsub.f32 %v1012_v7, %v57_v53  ;;  %v68_v11 = vsub.f32 %v1017_v8, %v57_v53  ;;  %v69_v13 = vsub.f32 %v1027_v12, %v57_v53  ;;  %v134_v15 = vmul.f32 %v1099_v60, %v1099_v60 }
  0xa6   :  { %v147_v3 = vadd.f32 %v132_v62, %v131_v61  ;;  %v1126_v18 = vmul.f32 %v1076_v40, %v66_v4  ;;  %v70_v5 = vsub.f32 %v1038_v16, %v57_v53  ;;  %v1136_v8 = vmul.f32 %v1106_v0, %v64_v63  ;;  %v201_v62 = vld [vmem:[%s1580_s2] sm:$0xff] }
  0xa7   :  { %v1130_v7 = vmul.f32 %v1078_v41, %v67_v6  ;;  %v1133_v19 = vmul.f32 %v1080_v42, %v68_v11  ;;  %v135_v12 = vmul.f32 %v1109_v1, %v1109_v1  ;;  %v71_v22 = vsub.f32 %v1050_v20, %v57_v53  ;;  %v167_v11 = vld [vmem:[%s1581_s1] sm:$0xff] }
  0xa8   :  { %v148_v17 = vadd.f32 %v147_v3, %v133_v2  ;;  %v1142_v23 = vmul.f32 %v1082_v43, %v69_v13  ;;  %v139_v16 = vmul.f32 %v1126_v18, %v1126_v18  ;;  %v122_v26 = vmul.f32 %v1116_v10, %v65_v9 }
  0xa9   :  { %v140_v25 = vmul.f32 %v1130_v7, %v1130_v7  ;;  %v136_v28 = vmul.f32 %v1121_v14, %v1121_v14  ;;  %v72_v30 = vsub.f32 %v1062_v24, %v57_v53  ;;  %v1153_v31 = vmul.f32 %v1084_v51, %v70_v5 }
  0xaa   :  { %v149_v21 = vadd.f32 %v148_v17, %v134_v15  ;;  %v141_v20 = vmul.f32 %v1133_v19, %v1133_v19  ;;  %v137_v33 = vmul.f32 %v1136_v8, %v1136_v8  ;;  %v73_v35 = vsub.f32 %v1069_v27, %v57_v53  ;;  %v168_v17 = vld [vmem:[%s1581_s1 + $0x8] sm:$0xff]  ;;  %s954_s1 = smov 126  }
  0xab   :  { %v156_v32 = vadd.f32 %v140_v25, %v139_v16  ;;  %v1161_v36 = vmul.f32 %v1095_v57, %v71_v22  ;;  %v142_v37 = vmul.f32 %v1142_v23, %v1142_v23  ;;  %v138_v38 = vmul.f32 %v122_v26, %v122_v26 }
  0xac   :  { %v150_v29 = vadd.f32 %v149_v21, %v135_v12  ;;  %v1166_v44 = vmul.f32 %v1106_v0, %v72_v30  ;;  %v143_v45 = vmul.f32 %v1153_v31, %v1153_v31  ;;  %v1171_v48 = vmul.f32 %v1116_v10, %v73_v35  ;;  %v202_v21 = vld [vmem:[%s1580_s2 + $0x8] sm:$0xff]  ;;  %s955_s2 = smov 127  }
  0xad   :  { %v157_v24 = vadd.f32 %v156_v32, %v141_v20  ;;  %v144_v27 = vmul.f32 %v1161_v36, %v1161_v36  ;;  %v953_v61 = vmov 0  }
  0xae   :  { %v151_v34 = vadd.f32 %v150_v29, %v136_v28  ;;  %v145_v50 = vmul.f32 %v1166_v44, %v1166_v44  ;;  %v146_v53 = vmul.f32 %v1171_v48, %v1171_v48  ;;  %942 = vset.pattern.permute.xlu1 %v953_v61  ;;  %941 = vset.pattern.permute.xlu0 %v953_v61 }
  0xaf   :  { %v158_v46 = vadd.f32 %v157_v24, %v142_v37 }
  0xb0   :  { %v152_v39 = vadd.f32 %v151_v34, %v137_v33 }
  0xb1   :  { %v159_v49 = vadd.f32 %v158_v46, %v143_v45 }
  0xb2   :  { %v153_v47 = vadd.f32 %v152_v39, %v138_v38 }
  0xb3   :  { %v160_v52 = vadd.f32 %v159_v49, %v144_v27 }
  0xb4   :  { %154 = vadd.xlane.f32.xlu1 %v153_v47 }
  0xb5   :  { %v161_v58 = vadd.f32 %v160_v52, %v145_v50 }
  0xb7   :  { %v162_v59 = vadd.f32 %v161_v58, %v146_v53 }
  0xb9   :  { %163 = vadd.xlane.f32.xlu1 %v162_v59 }
  0xca   :  { %205 = vperm.xlu1 %942, %v201_v62  }
 0x141   :  { %v155_v63 = vpop.xlane.xlu1 %154 }
 0x142   :  { %v165_v2 = vmul.f32 0.0012755102, %v155_v63 }
 0x144   :  { %v169_v3 = vadd.f32 0.001, %v165_v2 }
 0x146   :  { %949 = vrsqrt.f32 %v169_v3  ;;  %v164_v4 = vpop.xlane.xlu1 %163 }
 0x147   :  { %v166_v6 = vmul.f32 0.0012755102, %v164_v4 }
 0x149   :  { %v170_v9 = vadd.f32 0.001, %v166_v6 }
 0x14a   :  { %v206_v16 = vpop.permute.xlu1 %205 }
 0x14b   :  { %951 = vrsqrt.f32 %v170_v9 }
 0x150   :  { %v950_v13 = vpop.eup %949 }
 0x151   :  { %v173_v15 = vmul.f32 %v950_v13, %v167_v11 }
 0x153   :  { %177 = vperm.xlu0 %941, %v173_v15  }
 0x155   :  { %v952_v5 = vpop.eup %951 }
 0x156   :  { %v174_v12 = vmul.f32 %v952_v5, %v168_v17 }
 0x158   :  { %182 = vperm.xlu1 %942, %v174_v12  }
 0x15c   :  { %210 = vperm.xlu1 %942, %v202_v21  }
 0x1d2   :  { %v178_v22 = vpop.permute.xlu0 %177 }
 0x1d3   :  { %v185_v25 = vmul.f32 %v178_v22, %v1087_v54  ;;  %v186_v28 = vmul.f32 %v178_v22, %v1090_v55  ;;  %v187_v29 = vmul.f32 %v178_v22, %v1093_v56  ;;  %v188_v30 = vmul.f32 %v178_v22, %v1099_v60 }
 0x1d4   :  { %v190_v20 = vmul.f32 %v178_v22, %v1121_v14  ;;  %v191_v32 = vmul.f32 %v178_v22, %v1136_v8  ;;  %v192_v33 = vmul.f32 %v178_v22, %v122_v26  ;;  %v189_v38 = vmul.f32 %v178_v22, %v1109_v1 }
 0x1d5   :  { %v213_v34 = vadd.f32 %v206_v16, %v185_v25  ;;  %v214_v35 = vadd.f32 %v206_v16, %v186_v28  ;;  %v215_v37 = vadd.f32 %v206_v16, %v187_v29  ;;  %v216_v24 = vadd.f32 %v206_v16, %v188_v30 }
 0x1d6   :  { %v218_v39 = vadd.f32 %v206_v16, %v190_v20  ;;  %v219_v45 = vadd.f32 %v206_v16, %v191_v32  ;;  %v220_v54 = vadd.f32 %v206_v16, %v192_v33  ;;  %v217_v14 = vadd.f32 %v206_v16, %v189_v38 }
 0x1d7   :  { %v229_v46 = vmax.f32 %v213_v34, 0.0  ;;  %v230_v55 = vmax.f32 %v214_v35, 0.0  ;;  %v231_v47 = vmax.f32 %v215_v37, 0.0  ;;  %v232_v56 = vmax.f32 %v216_v24, 0.0  ;;  %v183_v49 = vpop.permute.xlu1 %182 }
 0x1d8   :  { %v234_v27 = vmax.f32 %v218_v39, 0.0  ;;  %v235_v60 = vmax.f32 %v219_v45, 0.0  ;;  %v236_v50 = vmax.f32 %v220_v54, 0.0  ;;  %v193_v59 = vmul.f32 %v183_v49, %v1126_v18 }
 0x1d9   :  { %v245_v8 = vmul.f32 %v229_v46, %v1076_v40  ;;  %v246_v26 = vmul.f32 %v230_v55, %v1078_v41  ;;  %v247_v52 = vmul.f32 %v231_v47, %v1080_v42  ;;  %v248_v1 = vmul.f32 %v232_v56, %v1082_v43 }
 0x1da   :  { %v250_v53 = vmul.f32 %v234_v27, %v1095_v57  ;;  %v251_v58 = vmul.f32 %v235_v60, %v1106_v0  ;;  %v194_v62 = vmul.f32 %v183_v49, %v1130_v7  ;;  %v195_v63 = vmul.f32 %v183_v49, %v1133_v19 }
 0x1db   :  { %v196_v2 = vmul.f32 %v183_v49, %v1142_v23  ;;  %v197_v3 = vmul.f32 %v183_v49, %v1153_v31  ;;  %v198_v4 = vmul.f32 %v183_v49, %v1161_v36  ;;  %v199_v6 = vmul.f32 %v183_v49, %v1166_v44  ;;  %v211_v11 = vpop.permute.xlu1 %210 }
 0x1dc   :  { %v200_v9 = vmul.f32 %v183_v49, %v1171_v48  ;;  %v221_v13 = vadd.f32 %v211_v11, %v193_v59  ;;  %v222_v15 = vadd.f32 %v211_v11, %v194_v62  ;;  %v223_v17 = vadd.f32 %v211_v11, %v195_v63 }
 0x1dd   :  { %v224_v5 = vadd.f32 %v211_v11, %v196_v2  ;;  %v225_v18 = vadd.f32 %v211_v11, %v197_v3  ;;  %v226_v12 = vadd.f32 %v211_v11, %v198_v4  ;;  %v227_v7 = vadd.f32 %v211_v11, %v199_v6 }
 0x1de   :  { %v228_v21 = vadd.f32 %v211_v11, %v200_v9  ;;  %v237_v19 = vmax.f32 %v221_v13, 0.0  ;;  %v238_v22 = vmax.f32 %v222_v15, 0.0  ;;  %v239_v23 = vmax.f32 %v223_v17, 0.0 }
 0x1df   :  { %v240_v16 = vmax.f32 %v224_v5, 0.0  ;;  %v252_v31 = vmul.f32 %v236_v50, %v1116_v10  ;;  %v242_v36 = vmax.f32 %v226_v12, 0.0  ;;  %v243_v25 = vmax.f32 %v227_v7, 0.0 }
 0x1e0   :  { %v244_v44 = vmax.f32 %v228_v21, 0.0  ;;  %v253_v48 = vmul.f32 %v237_v19, %v1076_v40  ;;  %v254_v28 = vmul.f32 %v238_v22, %v1078_v41  ;;  %v255_v29 = vmul.f32 %v239_v23, %v1080_v42 }
 0x1e1   :  { %v256_v30 = vmul.f32 %v240_v16, %v1082_v43  ;;  %v241_v20 = vmax.f32 %v225_v18, 0.0  ;;  %v258_v32 = vmul.f32 %v242_v36, %v1095_v57  ;;  %v259_v33 = vmul.f32 %v243_v25, %v1106_v0 }
 0x1e2   :  { %v260_v34 = vmul.f32 %v244_v44, %v1116_v10  ;;  %v261_v35 = vpack.c.bf16 %v253_v48, %v245_v8  ;;  %v262_v37 = vpack.c.bf16 %v254_v28, %v246_v26  ;;  %v1222_v24 = vpack.c.bf16 %v255_v29, %v247_v52 }
 0x1e3   :  { %v1224_v38 = vpack.c.bf16 %v256_v30, %v248_v1  ;;  %v1226_v40 = vpack.c.bf16 %v258_v32, %v250_v53  ;;  %v1228_v41 = vpack.c.bf16 %v259_v33, %v251_v58  ;;  %v233_v43 = vmax.f32 %v217_v14, 0.0 }
 0x1e4   :  { %v1230_v42 = vpack.c.bf16 %v260_v34, %v252_v31  ;;  %324 = vrot.lane.b32.xlu0 %v262_v37, %s954_s1  ;;  %286 = vrot.lane.b32.xlu1 %v262_v37, %s955_s2  ;;  %v257_v57 = vmul.f32 %v241_v20, %v1084_v51 }
 0x1e5   :  { %733 = vmatprep.subr.bf16.mxu1 %v1224_v38  ;;  %680 = vmatprep.subr.bf16.mxu0 %v262_v37  ;;  %v249_v0 = vmul.f32 %v233_v43, %v1084_v51  ;;  %v1300_v51 = vld [vmem:[%s1582_s4 + $0x4] ss:$8 sps:$4 sm:$0xff]  }
 0x1e6   :  { %681 = vmatpush1.bf16.msra.mxu0 %v261_v35  ;;  %734 = vmatpush1.bf16.msra.mxu1 %v1222_v24 }
 0x1e7   :  { %v1241_v10 = vpack.c.bf16 %v257_v57, %v249_v0  ;;  %924 = vmatprep.mubr.msk.bf16.mxu0 %vm673_vm0, %v1300_v51  ;;  %926 = vmatprep.mubr.msk.bf16.mxu1 %vm673_vm0, %v1300_v51 }
 0x1e8   :  { %322 = vrot.lane.b32.xlu0 %v261_v35, %s954_s1  ;;  %288 = vrot.lane.b32.xlu1 %v1222_v24, %s955_s2 }
 0x1ec   :  { %330 = vrot.lane.b32.xlu0 %v1241_v10, %s954_s1  ;;  %284 = vrot.lane.b32.xlu1 %v261_v35, %s955_s2 }
 0x1f0   :  { %364 = vrot.lane.b32.xlu0 %v1222_v24, %s956_s8  ;;  %290 = vrot.lane.b32.xlu1 %v1224_v38, %s955_s2 }
 0x1f4   :  { %366 = vrot.lane.b32.xlu0 %v1224_v38, %s956_s8  ;;  %292 = vrot.lane.b32.xlu1 %v1241_v10, %s955_s2 }
 0x1f8   :  { %400 = vrot.lane.b32.xlu0 %v262_v37, %s957_s9  ;;  %326 = vrot.lane.b32.xlu1 %v1222_v24, %s954_s1 }
 0x1fc   :  { %398 = vrot.lane.b32.xlu0 %v261_v35, %s957_s9  ;;  %328 = vrot.lane.b32.xlu1 %v1224_v38, %s954_s1 }
 0x200   :  { %406 = vrot.lane.b32.xlu0 %v1241_v10, %s957_s9  ;;  %362 = vrot.lane.b32.xlu1 %v262_v37, %s956_s8 }
 0x204   :  { %440 = vrot.lane.b32.xlu0 %v1222_v24, %s958_s10  ;;  %360 = vrot.lane.b32.xlu1 %v261_v35, %s956_s8 }
 0x208   :  { %442 = vrot.lane.b32.xlu0 %v1224_v38, %s958_s10  ;;  %368 = vrot.lane.b32.xlu1 %v1241_v10, %s956_s8 }
 0x20c   :  { %476 = vrot.lane.b32.xlu0 %v262_v37, %s959_s11  ;;  %402 = vrot.lane.b32.xlu1 %v1222_v24, %s957_s9 }
 0x210   :  { %474 = vrot.lane.b32.xlu0 %v261_v35, %s959_s11  ;;  %404 = vrot.lane.b32.xlu1 %v1224_v38, %s957_s9 }
 0x214   :  { %482 = vrot.lane.b32.xlu0 %v1241_v10, %s959_s11  ;;  %438 = vrot.lane.b32.xlu1 %v262_v37, %s958_s10 }
 0x218   :  { %516 = vrot.lane.b32.xlu0 %v1222_v24, %s960_s12  ;;  %436 = vrot.lane.b32.xlu1 %v261_v35, %s958_s10 }
 0x21c   :  { %518 = vrot.lane.b32.xlu0 %v1224_v38, %s960_s12  ;;  %444 = vrot.lane.b32.xlu1 %v1241_v10, %s958_s10 }
 0x220   :  { %552 = vrot.lane.b32.xlu0 %v262_v37, %s961_s13  ;;  %478 = vrot.lane.b32.xlu1 %v1222_v24, %s959_s11 }
 0x224   :  { %550 = vrot.lane.b32.xlu0 %v261_v35, %s961_s13  ;;  %480 = vrot.lane.b32.xlu1 %v1224_v38, %s959_s11 }
 0x228   :  { %558 = vrot.lane.b32.xlu0 %v1241_v10, %s961_s13  ;;  %514 = vrot.lane.b32.xlu1 %v262_v37, %s960_s12 }
 0x22c   :  { %296 = vrot.lane.b32.xlu0 %v1228_v41, %s955_s2  ;;  %512 = vrot.lane.b32.xlu1 %v261_v35, %s960_s12 }
 0x230   :  { %332 = vrot.lane.b32.xlu0 %v1226_v40, %s954_s1  ;;  %520 = vrot.lane.b32.xlu1 %v1241_v10, %s960_s12 }
 0x234   :  { %336 = vrot.lane.b32.xlu0 %v1230_v42, %s954_s1  ;;  %554 = vrot.lane.b32.xlu1 %v1222_v24, %s961_s13 }
 0x238   :  { %372 = vrot.lane.b32.xlu0 %v1228_v41, %s956_s8  ;;  %556 = vrot.lane.b32.xlu1 %v1224_v38, %s961_s13 }
 0x23c   :  { %408 = vrot.lane.b32.xlu0 %v1226_v40, %s957_s9  ;;  %294 = vrot.lane.b32.xlu1 %v1226_v40, %s955_s2 }
 0x240   :  { %412 = vrot.lane.b32.xlu0 %v1230_v42, %s957_s9  ;;  %298 = vrot.lane.b32.xlu1 %v1230_v42, %s955_s2 }
 0x244   :  { %448 = vrot.lane.b32.xlu0 %v1228_v41, %s958_s10  ;;  %334 = vrot.lane.b32.xlu1 %v1228_v41, %s954_s1 }
 0x248   :  { %484 = vrot.lane.b32.xlu0 %v1226_v40, %s959_s11  ;;  %370 = vrot.lane.b32.xlu1 %v1226_v40, %s956_s8 }
 0x24c   :  { %488 = vrot.lane.b32.xlu0 %v1230_v42, %s959_s11  ;;  %374 = vrot.lane.b32.xlu1 %v1230_v42, %s956_s8 }
 0x250   :  { %524 = vrot.lane.b32.xlu0 %v1228_v41, %s960_s12  ;;  %410 = vrot.lane.b32.xlu1 %v1228_v41, %s957_s9 }
 0x254   :  { %560 = vrot.lane.b32.xlu0 %v1226_v40, %s961_s13  ;;  %446 = vrot.lane.b32.xlu1 %v1226_v40, %s958_s10 }
 0x256   :  { %v325_v39 = vpop.permute.xlu0 %324  ;;  %v287_v45 = vpop.permute.xlu1 %286 }
 0x258   :  { %564 = vrot.lane.b32.xlu0 %v1230_v42, %s961_s13  ;;  %450 = vrot.lane.b32.xlu1 %v1230_v42, %s958_s10 }
 0x25a   :  { %v323_v54 = vpop.permute.xlu0 %322  ;;  %v289_v46 = vpop.permute.xlu1 %288 }
 0x25b   :  { %v302_v55 = vsel %vm300_vm1, %v287_v45, %v289_v46  ;;  %v339_v58 = vsel %vm338_vm2, %v323_v54, %v325_v39 }
 0x25c   :  { %486 = vrot.lane.b32.xlu1 %v1228_v41, %s959_s11  ;;  %682 = vmatprep.subr.bf16.mxu0 %v302_v55 }
 0x25e   :  { %v1354_v47 = vpop.permute.xlu0 %330  ;;  %v285_v56 = vpop.permute.xlu1 %284 }
 0x25f   :  { %v301_v27 = vsel %vm300_vm1, %v285_v56, %v287_v45 }
 0x260   :  { %522 = vrot.lane.b32.xlu1 %v1226_v40, %s960_s12  ;;  %683 = vmatpush1.bf16.msra.mxu0 %v301_v27 }
 0x262   :  { %v365_v60 = vpop.permute.xlu0 %364  ;;  %v291_v49 = vpop.permute.xlu1 %290 }
 0x263   :  { %v303_v26 = vsel %vm300_vm1, %v289_v46, %v291_v49 }
 0x264   :  { %526 = vrot.lane.b32.xlu1 %v1230_v42, %s960_s12 }
 0x266   :  { %v367_v14 = vpop.permute.xlu0 %366  ;;  %v1361_v50 = vpop.permute.xlu1 %292 }
 0x267   :  { %v304_v8 = vsel %vm300_vm1, %v291_v49, %v1361_v50  ;;  %v379_v18 = vsel %vm376_vm3, %v365_v60, %v367_v14 }
 0x268   :  { %562 = vrot.lane.b32.xlu1 %v1228_v41, %s961_s13  ;;  %735 = vmatprep.subr.bf16.mxu1 %v304_v8 }
 0x269   :  { %736 = vmatpush1.bf16.msra.mxu1 %v303_v26 }
 0x26a   :  { %v401_v52 = vpop.permute.xlu0 %400  ;;  %v327_v1 = vpop.permute.xlu1 %326 }
 0x26b   :  { %v340_v53 = vsel %vm338_vm2, %v325_v39, %v327_v1 }
 0x26c   :  { %684 = vmatprep.subr.bf16.mxu0 %v340_v53 }
 0x26d   :  { %685 = vmatpush1.bf16.msra.mxu0 %v339_v58 }
 0x26e   :  { %v399_v59 = vpop.permute.xlu0 %398  ;;  %v329_v62 = vpop.permute.xlu1 %328 }
 0x26f   :  { %v342_v63 = vsel %vm338_vm2, %v329_v62, %v1354_v47  ;;  %v341_v2 = vsel %vm338_vm2, %v327_v1, %v329_v62  ;;  %v415_v19 = vsel %vm414_vm4, %v399_v59, %v401_v52  ;;  %v1415_v1 = vld [vmem:[%s1582_s4] ss:$8 sps:$4 sm:$0xff]   ;;  %v1421_v59 = vld [vmem:[%s1582_s4 + $0x14] ss:$8 sps:$4 sm:$0xff]  }
 0x270   :  { %737 = vmatprep.subr.bf16.mxu1 %v342_v63 }
 0x271   :  { %738 = vmatpush1.bf16.msra.mxu1 %v341_v2 }
 0x272   :  { %v1373_v3 = vpop.permute.xlu0 %406  ;;  %v363_v4 = vpop.permute.xlu1 %362 }
 0x273   :  { %v378_v6 = vsel %vm376_vm3, %v363_v4, %v365_v60 }
 0x274   :  { %686 = vmatprep.subr.bf16.mxu0 %v378_v6 }
 0x276   :  { %v441_v9 = vpop.permute.xlu0 %440  ;;  %v361_v11 = vpop.permute.xlu1 %360 }
 0x277   :  { %v377_v13 = vsel %vm376_vm3, %v361_v11, %v363_v4 }
 0x278   :  { %687 = vmatpush1.bf16.msra.mxu0 %v377_v13 }
 0x27a   :  { %v443_v15 = vpop.permute.xlu0 %442  ;;  %v1377_v17 = vpop.permute.xlu1 %368 }
 0x27b   :  { %v380_v5 = vsel %vm376_vm3, %v367_v14, %v1377_v17  ;;  %v455_v33 = vsel %vm452_vm5, %v441_v9, %v443_v15 }
 0x27c   :  { %739 = vmatprep.subr.bf16.mxu1 %v380_v5 }
 0x27d   :  { %740 = vmatpush1.bf16.msra.mxu1 %v379_v18 }
 0x27e   :  { %v477_v12 = vpop.permute.xlu0 %476  ;;  %v403_v7 = vpop.permute.xlu1 %402 }
 0x27f   :  { %v416_v21 = vsel %vm414_vm4, %v401_v52, %v403_v7 }
 0x280   :  { %688 = vmatprep.subr.bf16.mxu0 %v416_v21 }
 0x281   :  { %689 = vmatpush1.bf16.msra.mxu0 %v415_v19 }
 0x282   :  { %v475_v22 = vpop.permute.xlu0 %474  ;;  %v405_v23 = vpop.permute.xlu1 %404 }
 0x283   :  { %v418_v16 = vsel %vm414_vm4, %v405_v23, %v1373_v3  ;;  %v417_v31 = vsel %vm414_vm4, %v403_v7, %v405_v23  ;;  %v491_v24 = vsel %vm490_vm6, %v475_v22, %v477_v12 }
 0x284   :  { %741 = vmatprep.subr.bf16.mxu1 %v418_v16 }
 0x285   :  { %742 = vmatpush1.bf16.msra.mxu1 %v417_v31 }
 0x286   :  { %v1387_v36 = vpop.permute.xlu0 %482  ;;  %v439_v25 = vpop.permute.xlu1 %438 }
 0x287   :  { %v454_v44 = vsel %vm452_vm5, %v439_v25, %v441_v9  ;;  %v1438_v9 = vld [vmem:[%s1582_s4 + $0x10] ss:$8 sps:$4 sm:$0xff]  }
 0x288   :  { %690 = vmatprep.subr.bf16.mxu0 %v454_v44 }
 0x28a   :  { %v517_v48 = vpop.permute.xlu0 %516  ;;  %v437_v28 = vpop.permute.xlu1 %436 }
 0x28b   :  { %v453_v29 = vsel %vm452_vm5, %v437_v28, %v439_v25 }
 0x28c   :  { %691 = vmatpush1.bf16.msra.mxu0 %v453_v29 }
 0x28e   :  { %v519_v30 = vpop.permute.xlu0 %518  ;;  %v1391_v20 = vpop.permute.xlu1 %444 }
 0x28f   :  { %v456_v32 = vsel %vm452_vm5, %v443_v15, %v1391_v20  ;;  %v531_v49 = vsel %vm528_vm7, %v517_v48, %v519_v30 }
 0x290   :  { %743 = vmatprep.subr.bf16.mxu1 %v456_v32 }
 0x291   :  { %744 = vmatpush1.bf16.msra.mxu1 %v455_v33 }
 0x292   :  { %v553_v34 = vpop.permute.xlu0 %552  ;;  %v479_v35 = vpop.permute.xlu1 %478 }
 0x293   :  { %v492_v37 = vsel %vm490_vm6, %v477_v12, %v479_v35 }
 0x294   :  { %692 = vmatprep.subr.bf16.mxu0 %v492_v37 }
 0x295   :  { %693 = vmatpush1.bf16.msra.mxu0 %v491_v24 }
 0x296   :  { %v551_v38 = vpop.permute.xlu0 %550  ;;  %v481_v42 = vpop.permute.xlu1 %480 }
 0x297   :  { %v494_v43 = vsel %vm490_vm6, %v481_v42, %v1387_v36  ;;  %v493_v57 = vsel %vm490_vm6, %v479_v35, %v481_v42  ;;  %v567_v52 = vsel %vm566_vm8, %v551_v38, %v553_v34 }
 0x298   :  { %745 = vmatprep.subr.bf16.mxu1 %v494_v43 }
 0x299   :  { %746 = vmatpush1.bf16.msra.mxu1 %v493_v57 }
 0x29a   :  { %v1401_v0 = vpop.permute.xlu0 %558  ;;  %v515_v39 = vpop.permute.xlu1 %514 }
 0x29b   :  { %v530_v45 = vsel %vm528_vm7, %v515_v39, %v517_v48 }
 0x29c   :  { %694 = vmatprep.subr.bf16.mxu0 %v530_v45 }
 0x29e   :  { %v297_v54 = vpop.permute.xlu0 %296  ;;  %v513_v46 = vpop.permute.xlu1 %512 }
 0x29f   :  { %v529_v55 = vsel %vm528_vm7, %v513_v46, %v515_v39 }
 0x2a0   :  { %695 = vmatpush1.bf16.msra.mxu0 %v529_v55 }
 0x2a2   :  { %v333_v56 = vpop.permute.xlu0 %332  ;;  %v1405_v27 = vpop.permute.xlu1 %520 }
 0x2a3   :  { %v532_v60 = vsel %vm528_vm7, %v519_v30, %v1405_v27  ;;  %v343_v5 = vsel %vm338_vm2, %v1354_v47, %v333_v56 }
 0x2a4   :  { %747 = vmatprep.subr.bf16.mxu1 %v532_v60 }
 0x2a5   :  { %748 = vmatpush1.bf16.msra.mxu1 %v531_v49 }
 0x2a6   :  { %v337_v14 = vpop.permute.xlu0 %336  ;;  %v555_v8 = vpop.permute.xlu1 %554 }
 0x2a7   :  { %v568_v26 = vsel %vm566_vm8, %v553_v34, %v555_v8 }
 0x2a8   :  { %696 = vmatprep.subr.bf16.mxu0 %v568_v26 }
 0x2a9   :  { %697 = vmatpush1.bf16.msra.mxu0 %v567_v52 }
 0x2aa   :  { %v373_v53 = vpop.permute.xlu0 %372  ;;  %v557_v58 = vpop.permute.xlu1 %556  ;;  %786 = vmatprep.subr.bf16.mxu0 %v1226_v40 }
 0x2ab   :  { %v570_v62 = vsel %vm566_vm8, %v557_v58, %v1401_v0  ;;  %v569_v63 = vsel %vm566_vm8, %v555_v8, %v557_v58 }
 0x2ac   :  { %749 = vmatprep.subr.bf16.mxu1 %v570_v62  ;;  %713 = vmatmul.mubr.bf16.vlgmr.msra.gmra.mrb[0].mxu0 %v1415_v1 }
 0x2ad   :  { %750 = vmatpush1.bf16.msra.mxu1 %v569_v63  ;;  %787 = vmatpush1.bf16.msra.mxu0 %v1241_v10 }
 0x2ae   :  { %v295_v2 = vpop.permute.xlu1 %294  ;;  %839 = vmatprep.subr.bf16.mxu1 %v953_v61  ;;  %925 = vmatprep.mubr.msk.bf16.mxu0 %vm673_vm0, %v1421_v59  ;;  %v409_v6 = vpop.permute.xlu0 %408 }
 0x2af   :  { %v305_v40 = vsel %vm300_vm1, %v1361_v50, %v295_v2  ;;  %v306_v4 = vsel %vm300_vm1, %v295_v2, %v297_v54 }
 0x2b0   :  { %788 = vmatprep.subr.bf16.mxu0 %v306_v4  ;;  %766 = vmatmul.mubr.bf16.vlgmr.msra.gmra.mrb[0].mxu1 %v1415_v1 }
 0x2b1   :  { %789 = vmatpush1.bf16.msra.mxu0 %v305_v40  ;;  %840 = vmatpush1.bf16.msra.mxu1 %v1228_v41 }
 0x2b2   :  { %v299_v10 = vpop.permute.xlu1 %298  ;;  %841 = vmatprep.subr.bf16.mxu1 %v953_v61  ;;  %927 = vmatprep.mubr.msk.bf16.mxu1 %vm673_vm0, %v1421_v59  ;;  %v413_v11 = vpop.permute.xlu0 %412 }
 0x2b3   :  { %v307_v50 = vsel %vm300_vm1, %v297_v54, %v299_v10 }
 0x2b4   :  { %723 = vmatmul.mubr.bf16.gmra.mrb[4].mxu0 %v1438_v9 }
 0x2b5   :  { %842 = vmatpush1.bf16.msra.mxu1 %v307_v50  ;;  %928 = vmatprep.mubr.msk.bf16.mxu0 %vm673_vm0, %v1300_v51 }
 0x2b6   :  { %v335_v13 = vpop.permute.xlu1 %334  ;;  %843 = vmatprep.subr.bf16.mxu1 %v953_v61  ;;  %v449_v21 = vpop.permute.xlu0 %448 }
 0x2b7   :  { %v345_v41 = vsel %vm338_vm2, %v335_v13, %v337_v14  ;;  %v344_v15 = vsel %vm338_vm2, %v333_v56, %v335_v13 }
 0x2b8   :  { %790 = vmatprep.subr.bf16.mxu0 %v344_v15  ;;  %776 = vmatmul.mubr.bf16.gmra.mrb[4].mxu1 %v1438_v9 }
 0x2b9   :  { %791 = vmatpush1.bf16.msra.mxu0 %v343_v5  ;;  %844 = vmatpush1.bf16.msra.mxu1 %v345_v41 }
 0x2ba   :  { %v371_v18 = vpop.permute.xlu1 %370  ;;  %845 = vmatprep.subr.bf16.mxu1 %v953_v61  ;;  %930 = vmatprep.mubr.msk.bf16.mxu1 %vm673_vm0, %v1300_v51  ;;  %v485_v22 = vpop.permute.xlu0 %484 }
 0x2bb   :  { %v381_v12 = vsel %vm376_vm3, %v1377_v17, %v371_v18  ;;  %v382_v7 = vsel %vm376_vm3, %v371_v18, %v373_v53  ;;  %v419_v17 = vsel %vm414_vm4, %v1373_v3, %v409_v6 }
 0x2bc   :  { %792 = vmatprep.subr.bf16.mxu0 %v382_v7 }
 0x2bd   :  { %793 = vmatpush1.bf16.msra.mxu0 %v381_v12 }
 0x2be   :  { %v375_v47 = vpop.permute.xlu1 %374  ;;  %v489_v48 = vpop.permute.xlu0 %488 }
 0x2bf   :  { %v383_v19 = vsel %vm376_vm3, %v373_v53, %v375_v47 }
 0x2c0   :  { %846 = vmatpush1.bf16.msra.mxu1 %v383_v19 }
 0x2c1   :  { %847 = vmatprep.subr.bf16.mxu1 %v953_v61 }
 0x2c2   :  { %v411_v23 = vpop.permute.xlu1 %410  ;;  %v525_v3 = vpop.permute.xlu0 %524 }
 0x2c3   :  { %v421_v16 = vsel %vm414_vm4, %v411_v23, %v413_v11  ;;  %v420_v51 = vsel %vm414_vm4, %v409_v6, %v411_v23 }
 0x2c4   :  { %794 = vmatprep.subr.bf16.mxu0 %v420_v51  ;;  %848 = vmatpush1.bf16.msra.mxu1 %v421_v16 }
 0x2c5   :  { %795 = vmatpush1.bf16.msra.mxu0 %v419_v17  ;;  %849 = vmatprep.subr.bf16.mxu1 %v953_v61 }
 0x2c6   :  { %v447_v31 = vpop.permute.xlu1 %446  ;;  %v561_v24 = vpop.permute.xlu0 %560 }
 0x2c7   :  { %v457_v25 = vsel %vm452_vm5, %v1391_v20, %v447_v31  ;;  %v458_v44 = vsel %vm452_vm5, %v447_v31, %v449_v21  ;;  %v495_v20 = vsel %vm490_vm6, %v1387_v36, %v485_v22  ;;  %v571_v45 = vsel %vm566_vm8, %v1401_v0, %v561_v24 }
 0x2c8   :  { %796 = vmatprep.subr.bf16.mxu0 %v458_v44 }
 0x2c9   :  { %797 = vmatpush1.bf16.msra.mxu0 %v457_v25 }
 0x2ca   :  { %v451_v28 = vpop.permute.xlu1 %450  ;;  %v565_v36 = vpop.permute.xlu0 %564 }
 0x2cb   :  { %v459_v29 = vsel %vm452_vm5, %v449_v21, %v451_v28 }
 0x2cc   :  { %850 = vmatpush1.bf16.msra.mxu1 %v459_v29 }
 0x2cd   :  { %851 = vmatprep.subr.bf16.mxu1 %v953_v61 }
 0x2ce   :  { %v487_v30 = vpop.permute.xlu1 %486 }
 0x2cf   :  { %v497_v32 = vsel %vm490_vm6, %v487_v30, %v489_v48  ;;  %v496_v33 = vsel %vm490_vm6, %v485_v22, %v487_v30 }
 0x2d0   :  { %798 = vmatprep.subr.bf16.mxu0 %v496_v33  ;;  %852 = vmatpush1.bf16.msra.mxu1 %v497_v32 }
 0x2d1   :  { %799 = vmatpush1.bf16.msra.mxu0 %v495_v20  ;;  %853 = vmatprep.subr.bf16.mxu1 %v953_v61 }
 0x2d2   :  { %v523_v34 = vpop.permute.xlu1 %522 }
 0x2d3   :  { %v533_v35 = vsel %vm528_vm7, %v1405_v27, %v523_v34  ;;  %v534_v37 = vsel %vm528_vm7, %v523_v34, %v525_v3 }
 0x2d4   :  { %800 = vmatprep.subr.bf16.mxu0 %v534_v37 }
 0x2d5   :  { %801 = vmatpush1.bf16.msra.mxu0 %v533_v35 }
 0x2d6   :  { %v527_v38 = vpop.permute.xlu1 %526 }
 0x2d7   :  { %v535_v42 = vsel %vm528_vm7, %v525_v3, %v527_v38 }
 0x2d8   :  { %854 = vmatpush1.bf16.msra.mxu1 %v535_v42 }
 0x2d9   :  { %855 = vmatprep.subr.bf16.mxu1 %v953_v61 }
 0x2da   :  { %v563_v43 = vpop.permute.xlu1 %562 }
 0x2db   :  { %v573_v57 = vsel %vm566_vm8, %v563_v43, %v565_v36  ;;  %v572_v39 = vsel %vm566_vm8, %v561_v24, %v563_v43 }
 0x2dc   :  { %802 = vmatprep.subr.bf16.mxu0 %v572_v39  ;;  %856 = vmatpush1.bf16.msra.mxu1 %v573_v57 }
 0x2dd   :  { %803 = vmatpush1.bf16.msra.mxu0 %v571_v45 }
 0x2df   :  { %872 = vmatmul.mubr.bf16.vlgmr.msra.gmra.mrb[8].mxu1 %v1415_v1 }
 0x2e0   :  { %819 = vmatmul.mubr.bf16.vlgmr.msra.gmra.mrb[8].mxu0 %v1415_v1  ;;  %931 = vmatprep.mubr.msk.bf16.mxu1 %vm673_vm0, %v1421_v59 }
 0x2e1   :  { %929 = vmatprep.mubr.msk.bf16.mxu0 %vm673_vm0, %v1421_v59 }
 0x2e7   :  { %880 = vmatmul.mubr.bf16.gmra.mrb[12].mxu1 %v1438_v9 }
 0x2e8   :  { %829 = vmatmul.mubr.bf16.gmra.mrb[12].mxu0 %v1438_v9 }
 0x37f   :  { %v714_v61 = vpop.f32.mrb[0].mxu0 }
 0x380   :  { %888 = vst [vmem:[%s1583_s5] sm:$0xff] %v714_v61  ;;  %v716_v0 = vpop.f32.mrb[1].mxu0 }
 0x381   :  { %889 = vst [vmem:[%s1583_s5 + $0x8] sm:$0xff] %v716_v0  ;;  %v718_v54 = vpop.f32.mrb[2].mxu0 }
 0x382   :  { %895 = vst [vmem:[%s1583_s5 + $0x38] sm:$0xff] %v718_v54  ;;  %v720_v46 = vpop.f32.mrb[3].mxu0 }
 0x383   :  { %v767_v55 = vpop.f32.mrb[0].mxu1  ;;  %896 = vst [vmem:[%s1583_s5 + $0x40] sm:$0xff] %v720_v46 }
 0x384   :  { %890 = vst [vmem:[%s1583_s5 + $0x10] sm:$0xff] %v767_v55  ;;  %v769_v56 = vpop.f32.mrb[1].mxu1 }
 0x385   :  { %891 = vst [vmem:[%s1583_s5 + $0x18] sm:$0xff] %v769_v56  ;;  %v771_v27 = vpop.f32.mrb[2].mxu1 }
 0x386   :  { %897 = vst [vmem:[%s1583_s5 + $0x48] sm:$0xff] %v771_v27  ;;  %v773_v60 = vpop.f32.mrb[3].mxu1 }
 0x387   :  { %898 = vst [vmem:[%s1583_s5 + $0x50] sm:$0xff] %v773_v60  ;;  %v724_v49 = vpop.f32.mrb[4].mxu0 }
 0x388   :  { %902 = vst [vmem:[%s1583_s5 + $0x70] sm:$0xff] %v724_v49  ;;  %v726_v14 = vpop.f32.mrb[5].mxu0 }
 0x389   :  { %903 = vst [vmem:[%s1583_s5 + $0x78] sm:$0xff] %v726_v14  ;;  %v728_v8 = vpop.f32.mrb[6].mxu0 }
 0x38a   :  { %909 = vst [vmem:[%s1583_s5 + $0xa8] sm:$0xff] %v728_v8  ;;  %v730_v26 = vpop.f32.mrb[7].mxu0 }
 0x38b   :  { %v777_v52 = vpop.f32.mrb[4].mxu1  ;;  %910 = vst [vmem:[%s1583_s5 + $0xb0] sm:$0xff] %v730_v26 }
 0x38c   :  { %904 = vst [vmem:[%s1583_s5 + $0x80] sm:$0xff] %v777_v52  ;;  %v779_v1 = vpop.f32.mrb[5].mxu1 }
 0x38d   :  { %905 = vst [vmem:[%s1583_s5 + $0x88] sm:$0xff] %v779_v1  ;;  %v781_v53 = vpop.f32.mrb[6].mxu1 }
 0x38e   :  { %911 = vst [vmem:[%s1583_s5 + $0xb8] sm:$0xff] %v781_v53  ;;  %v783_v58 = vpop.f32.mrb[7].mxu1 }
 0x38f   :  { %912 = vst [vmem:[%s1583_s5 + $0xc0] sm:$0xff] %v783_v58 }
 0x3b2   :  { %v873_v59 = vpop.f32.mrb[8].mxu1 }
 0x3b3   :  { %894 = vst [vmem:[%s1583_s5 + $0x30] sm:$0xff] %v873_v59  ;;  %v820_v62 = vpop.f32.mrb[8].mxu0  ;;  %v875_v63 = vpop.f32.mrb[9].mxu1 }
 0x3b4   :  { %892 = vst [vmem:[%s1583_s5 + $0x20] sm:$0xff] %v820_v62  ;;  %v822_v2 = vpop.f32.mrb[9].mxu0  ;;  %v876_v40 = vpop.f32.mrb[10].mxu1 }
 0x3b5   :  { %893 = vst [vmem:[%s1583_s5 + $0x28] sm:$0xff] %v822_v2  ;;  %901 = vst [vmem:[%s1583_s5 + $0x68] sm:$0xff] %v876_v40  ;;  %v824_v4 = vpop.f32.mrb[10].mxu0  ;;  %v878_v6 = vpop.f32.mrb[11].mxu1 }
 0x3b6   :  { %899 = vst [vmem:[%s1583_s5 + $0x58] sm:$0xff] %v824_v4  ;;  %v826_v9 = vpop.f32.mrb[11].mxu0 }
 0x3b7   :  { %900 = vst [vmem:[%s1583_s5 + $0x60] sm:$0xff] %v826_v9 }
 0x3ba   :  { %v881_v10 = vpop.f32.mrb[12].mxu1 }
 0x3bb   :  { %908 = vst [vmem:[%s1583_s5 + $0xa0] sm:$0xff] %v881_v10  ;;  %v830_v50 = vpop.f32.mrb[12].mxu0  ;;  %v883_v11 = vpop.f32.mrb[13].mxu1 }
 0x3bc   :  { %906 = vst [vmem:[%s1583_s5 + $0x90] sm:$0xff] %v830_v50  ;;  %v832_v13 = vpop.f32.mrb[13].mxu0  ;;  %v884_v41 = vpop.f32.mrb[14].mxu1 }
 0x3bd   :  { %907 = vst [vmem:[%s1583_s5 + $0x98] sm:$0xff] %v832_v13  ;;  %915 = vst [vmem:[%s1583_s5 + $0xd8] sm:$0xff] %v884_v41  ;;  %v834_v15 = vpop.f32.mrb[14].mxu0  ;;  %v886_v5 = vpop.f32.mrb[15].mxu1 }
 0x3be   :  { %913 = vst [vmem:[%s1583_s5 + $0xc8] sm:$0xff] %v834_v15  ;;  %v836_v18 = vpop.f32.mrb[15].mxu0 }
 0x3bf   :  { %914 = vst [vmem:[%s1583_s5 + $0xd0] sm:$0xff] %v836_v18 }

</bundles_post_ra>
